<compile_context>
chip_gen: v5e
topology: v5e:2x2
jax: 0.10.0
libtpu: 0.0.40
codegen_flags: <defaults>
</compile_context>

<pallas_src>
import functools

import jax
import jax.numpy as jnp
from jax import lax
from jax.experimental import pallas as pl
from jax.experimental.pallas import tpu as pltpu

_LANES = 128


def _dice_stats_kernel(labels_ref, logits_ref, tp_out, pc_out, tc_out,
                       tp_acc, pc_acc, tc_acc, *,
                       hw, rows_tile, tiles_per_split, need_mask):
    p = pl.program_id(1)
    t = pl.program_id(2)
    n_cls = logits_ref.shape[1]

    @pl.when(t == 0)
    def _():
        tp_acc[...] = jnp.zeros_like(tp_acc)
        pc_acc[...] = jnp.zeros_like(pc_acc)
        tc_acc[...] = jnp.zeros_like(tc_acc)

    labels = labels_ref[0, 0, :, :]                       # (rows_tile, 128) i32

    # Per-pixel argmax over classes: unrolled VPU max/compare tree on dense
    # per-class (rows_tile, 128) slabs.  Strict '>' gives first-occurrence
    # tie-break, matching torch.max / jnp.argmax.
    best_val = logits_ref[0, 0, :, :].astype(jnp.float32)
    best_idx = jnp.zeros_like(labels)
    for cls in range(1, n_cls):
        v = logits_ref[0, cls, :, :].astype(jnp.float32)
        take = v > best_val
        best_val = jnp.where(take, v, best_val)
        best_idx = jnp.where(take, jnp.int32(cls), best_idx)

    if need_mask:
        # Global element index of each slot in this (virtual) tile; anything
        # >= hw is padding / past-the-end and must not be counted.
        base_row = (p * tiles_per_split + t) * rows_tile
        row = lax.broadcasted_iota(jnp.int32, labels.shape, 0) + base_row
        lane = lax.broadcasted_iota(jnp.int32, labels.shape, 1)
        valid = (row * _LANES + lane) < hw
    else:
        valid = None

    for cls in range(n_cls):
        pred_c = best_idx == cls
        true_c = labels == cls
        if valid is not None:
            pred_c = jnp.logical_and(pred_c, valid)
            true_c = jnp.logical_and(true_c, valid)
        inter = jnp.logical_and(pred_c, true_c)
        # Per-tile reduction straight into one-vreg (C, 128) accumulators:
        # mostly elementwise vreg adds, exact int32 counts.
        tp_acc[cls:cls + 1, :] += jnp.sum(inter.astype(jnp.int32),
                                          axis=0, keepdims=True)
        pc_acc[cls:cls + 1, :] += jnp.sum(pred_c.astype(jnp.int32),
                                          axis=0, keepdims=True)
        tc_acc[cls:cls + 1, :] += jnp.sum(true_c.astype(jnp.int32),
                                          axis=0, keepdims=True)

    @pl.when(t == pl.num_programs(2) - 1)
    def _():
        # Single cross-lane reduction per (batch, split) chunk, outside the
        # hot loop.
        tp_out[0, 0] = jnp.sum(tp_acc[...], axis=1, keepdims=True)
        pc_out[0, 0] = jnp.sum(pc_acc[...], axis=1, keepdims=True)
        tc_out[0, 0] = jnp.sum(tc_acc[...], axis=1, keepdims=True)


def dice_coefficient(true_masks, out, *, vmem_budget_bytes=16 * 1024 * 1024):
    """true_masks: (N, H, W) int labels; out: (N, C, H, W) float logits."""
    n, c, h, w = out.shape
    hw = h * w
    rows = -(-hw // _LANES)                 # cdiv
    hw_pad = rows * _LANES

    logits = out.reshape(n, c, hw)          # free reshape, native memory order
    labels = true_masks.reshape(n, 1, hw).astype(jnp.int32)
    if hw_pad != hw:
        # TODO(synk): this pad copies the tensors once; it is only taken when
        # H*W is not a multiple of 128 (the lane-slab reshape below needs it).
        # Padded slots are masked in-kernel, so the pad value is irrelevant.
        logits = jnp.pad(logits, ((0, 0), (0, 0), (0, hw_pad - hw)))
        labels = jnp.pad(labels, ((0, 0), (0, 0), (0, hw_pad - hw)))
    logits = logits.reshape(n, c, rows, _LANES)
    labels = labels.reshape(n, 1, rows, _LANES)

    # VMEM sizing, sublane-padding exact: rows axis is a multiple of 8 (or the
    # full extent) and the lane axis is 128, so block bytes are exactly
    # rows_tile * 128 * itemsize per class slab, double-buffered.
    bytes_per_row = 2 * _LANES * (c * logits.dtype.itemsize
                                  + labels.dtype.itemsize)
    budget_rows = max(8, (vmem_budget_bytes // bytes_per_row) // 8 * 8)
    rows_tile = min(rows, budget_rows)
    if rows_tile != rows:
        rows_tile = max(8, rows_tile // 8 * 8)   # multiple of 8 unless full dim
    num_blocks = -(-rows // rows_tile)

    # Give v7x's two TensorCores a >=2-extent parallel axis even when n == 1.
    split = 2 if (n == 1 and num_blocks >= 2) else 1
    tiles_per_split = -(-num_blocks // split)
    covered = split * tiles_per_split

    need_mask = (hw_pad != hw) or (rows % rows_tile != 0) or (covered != num_blocks)

    def _row_block(p, t):
        blk = p * tiles_per_split + t
        if covered == num_blocks:
            return blk
        # Virtual tiles past the end re-read the last real block; the in-kernel
        # mask (based on the unclamped index) zeroes their contribution.
        return jnp.minimum(blk, num_blocks - 1)

    kernel = functools.partial(
        _dice_stats_kernel, hw=hw, rows_tile=rows_tile,
        tiles_per_split=tiles_per_split, need_mask=need_mask)

    stat = jax.ShapeDtypeStruct((n, split, c, 1), jnp.int32)
    tp, pc, tc = pl.pallas_call(
        kernel,
        out_shape=(stat, stat, stat),
        grid_spec=pltpu.PrefetchScalarGridSpec(
            num_scalar_prefetch=0,
            grid=(n, split, tiles_per_split),
            in_specs=[
                pl.BlockSpec((1, 1, rows_tile, _LANES),
                             lambda b, p, t: (b, 0, _row_block(p, t), 0)),
                pl.BlockSpec((1, c, rows_tile, _LANES),
                             lambda b, p, t: (b, 0, _row_block(p, t), 0)),
            ],
            out_specs=(
                pl.BlockSpec((1, 1, c, 1), lambda b, p, t: (b, p, 0, 0)),
                pl.BlockSpec((1, 1, c, 1), lambda b, p, t: (b, p, 0, 0)),
                pl.BlockSpec((1, 1, c, 1), lambda b, p, t: (b, p, 0, 0)),
            ),
            scratch_shapes=[
                pltpu.VMEM((c, _LANES), jnp.int32),   # true positives
                pltpu.VMEM((c, _LANES), jnp.int32),   # predicted counts
                pltpu.VMEM((c, _LANES), jnp.int32),   # label counts
            ],
        ),
        compiler_params=pltpu.CompilerParams(
            dimension_semantics=("parallel", "parallel", "arbitrary"),
            vmem_limit_bytes=40 * 1024 * 1024),
    )(labels, logits)

    tp = tp.sum(axis=(0, 1))[:, 0]     # exact int32 combine across batch/cores
    pc = pc.sum(axis=(0, 1))[:, 0]
    tc = tc.sum(axis=(0, 1))[:, 0]
    # Same 0/0 -> NaN behavior as the PyTorch reference (no smoothing epsilon).
    return 2.0 * tp.astype(jnp.float32) / (pc + tc).astype(jnp.float32)


def _reference(true_masks, out):
    n, c, h, w = out.shape
    probs = jnp.transpose(out, (0, 2, 3, 1)).reshape(-1, c)
    pred = jnp.argmax(probs, axis=1)
    true = true_masks.reshape(-1)
    dice = []
    for cls in range(c):
        tp = jnp.sum((pred == cls) & (true == cls)).astype(jnp.float32)
        div = (jnp.sum(pred == cls) + jnp.sum(true == cls)).astype(jnp.float32)
        dice.append(2.0 * tp / div)
    return jnp.stack(dice)


if __name__ == "__main__":
    key = jax.random.PRNGKey(0)
    k1, k2 = jax.random.split(key)
    N, C, H, W = 2, 4, 16, 16
    out = jax.random.normal(k1, (N, C, H, W), dtype=jnp.float32)
    true_masks = jax.random.randint(k2, (N, H, W), 0, C, dtype=jnp.int32)

    dice = dice_coefficient(true_masks, out)
    jax.block_until_ready(dice)

    ref = _reference(true_masks, out)
    assert jnp.allclose(dice, ref, atol=1e-6), (dice, ref)
    print("KERNEL_OK")
</pallas_src>

<mosaic_0001>
module attributes {stable_mosaic.version = 11 : i64} {
  func.func @_dice_stats_kernel(%arg0: i32, %arg1: i32, %arg2: i32, %arg3: memref<1x1x2x128xi32, #tpu.memory_space<vmem>>, %arg4: memref<1x4x2x128xf32, #tpu.memory_space<vmem>>, %arg5: memref<1x1x4x1xi32, #tpu.memory_space<vmem>>, %arg6: memref<1x1x4x1xi32, #tpu.memory_space<vmem>>, %arg7: memref<1x1x4x1xi32, #tpu.memory_space<vmem>>, %arg8: memref<4x128xi32, #tpu.memory_space<vmem>>, %arg9: memref<4x128xi32, #tpu.memory_space<vmem>>, %arg10: memref<4x128xi32, #tpu.memory_space<vmem>>) attributes {dimension_semantics = [#tpu.dimension_semantics<parallel>, #tpu.dimension_semantics<parallel>, #tpu.dimension_semantics<arbitrary>], iteration_bounds = array<i64: 2, 1, 1>, scalar_prefetch = 0 : i64, scratch_operands = 3 : i64, tpu.core_type = #tpu.core_type<tc>, window_params = [{transform_indices = @transform_0, window_bounds = array<i64: 1, 1, 2, 128>}, {transform_indices = @transform_1, window_bounds = array<i64: 1, 4, 2, 128>}, {transform_indices = @transform_2, window_bounds = array<i64: 1, 1, 4, 1>}, {transform_indices = @transform_3, window_bounds = array<i64: 1, 1, 4, 1>}, {transform_indices = @transform_4, window_bounds = array<i64: 1, 1, 4, 1>}]} {
    %c0_i32 = arith.constant 0 : i32
    %0 = arith.cmpi eq, %arg2, %c0_i32 : i32
    %1 = arith.extui %0 : i1 to i32
    %c0_i32_0 = arith.constant 0 : i32
    %2 = arith.cmpi ne, %1, %c0_i32_0 : i32
    scf.if %2 {
      %c0_i32_87 = arith.constant 0 : i32
      %120 = vector.broadcast %c0_i32_87 : i32 to vector<4x128xi32>
      %c0_88 = arith.constant 0 : index
      %c0_89 = arith.constant 0 : index
      %121 = vector.load %arg8[%c0_88, %c0_89] : memref<4x128xi32, #tpu.memory_space<vmem>>, vector<4x128xi32>
      tpu.vector_store %arg8[%c0_88, %c0_89], %120 {strides = array<i32>} : memref<4x128xi32, #tpu.memory_space<vmem>>, vector<4x128xi32>,
      %c0_i32_90 = arith.constant 0 : i32
      %122 = vector.broadcast %c0_i32_90 : i32 to vector<4x128xi32>
      %c0_91 = arith.constant 0 : index
      %c0_92 = arith.constant 0 : index
      %123 = vector.load %arg9[%c0_91, %c0_92] : memref<4x128xi32, #tpu.memory_space<vmem>>, vector<4x128xi32>
      tpu.vector_store %arg9[%c0_91, %c0_92], %122 {strides = array<i32>} : memref<4x128xi32, #tpu.memory_space<vmem>>, vector<4x128xi32>,
      %c0_i32_93 = arith.constant 0 : i32
      %124 = vector.broadcast %c0_i32_93 : i32 to vector<4x128xi32>
      %c0_94 = arith.constant 0 : index
      %c0_95 = arith.constant 0 : index
      %125 = vector.load %arg10[%c0_94, %c0_95] : memref<4x128xi32, #tpu.memory_space<vmem>>, vector<4x128xi32>
      tpu.vector_store %arg10[%c0_94, %c0_95], %124 {strides = array<i32>} : memref<4x128xi32, #tpu.memory_space<vmem>>, vector<4x128xi32>,
    } else {
    }
    %c0 = arith.constant 0 : index
    %c0_1 = arith.constant 0 : index
    %c0_2 = arith.constant 0 : index
    %c0_3 = arith.constant 0 : index
    %3 = vector.load %arg3[%c0, %c0_1, %c0_2, %c0_3] : memref<1x1x2x128xi32, #tpu.memory_space<vmem>>, vector<1x1x2x128xi32>
    %4 = vector.shape_cast %3 : vector<1x1x2x128xi32> to vector<2x128xi32>
    %c0_4 = arith.constant 0 : index
    %c0_5 = arith.constant 0 : index
    %c0_6 = arith.constant 0 : index
    %c0_7 = arith.constant 0 : index
    %5 = vector.load %arg4[%c0_4, %c0_5, %c0_6, %c0_7] : memref<1x4x2x128xf32, #tpu.memory_space<vmem>>, vector<1x1x2x128xf32>
    %6 = vector.shape_cast %5 : vector<1x1x2x128xf32> to vector<2x128xf32>
    %c0_i32_8 = arith.constant 0 : i32
    %7 = vector.broadcast %c0_i32_8 : i32 to vector<2x128xi32>
    %c0_9 = arith.constant 0 : index
    %c1 = arith.constant 1 : index
    %c0_10 = arith.constant 0 : index
    %c0_11 = arith.constant 0 : index
    %8 = vector.load %arg4[%c0_9, %c1, %c0_10, %c0_11] : memref<1x4x2x128xf32, #tpu.memory_space<vmem>>, vector<1x1x2x128xf32>
    %9 = vector.shape_cast %8 : vector<1x1x2x128xf32> to vector<2x128xf32>
    %10 = arith.cmpf ogt, %9, %6 : vector<2x128xf32>
    %11 = arith.select %10, %9, %6 : vector<2x128xi1>, vector<2x128xf32>
    %c1_i32 = arith.constant 1 : i32
    %12 = vector.broadcast %c1_i32 : i32 to vector<2x128xi32>
    %13 = arith.select %10, %12, %7 : vector<2x128xi1>, vector<2x128xi32>
    %c0_12 = arith.constant 0 : index
    %c2 = arith.constant 2 : index
    %c0_13 = arith.constant 0 : index
    %c0_14 = arith.constant 0 : index
    %14 = vector.load %arg4[%c0_12, %c2, %c0_13, %c0_14] : memref<1x4x2x128xf32, #tpu.memory_space<vmem>>, vector<1x1x2x128xf32>
    %15 = vector.shape_cast %14 : vector<1x1x2x128xf32> to vector<2x128xf32>
    %16 = arith.cmpf ogt, %15, %11 : vector<2x128xf32>
    %17 = arith.select %16, %15, %11 : vector<2x128xi1>, vector<2x128xf32>
    %c2_i32 = arith.constant 2 : i32
    %18 = vector.broadcast %c2_i32 : i32 to vector<2x128xi32>
    %19 = arith.select %16, %18, %13 : vector<2x128xi1>, vector<2x128xi32>
    %c0_15 = arith.constant 0 : index
    %c3 = arith.constant 3 : index
    %c0_16 = arith.constant 0 : index
    %c0_17 = arith.constant 0 : index
    %20 = vector.load %arg4[%c0_15, %c3, %c0_16, %c0_17] : memref<1x4x2x128xf32, #tpu.memory_space<vmem>>, vector<1x1x2x128xf32>
    %21 = vector.shape_cast %20 : vector<1x1x2x128xf32> to vector<2x128xf32>
    %22 = arith.cmpf ogt, %21, %17 : vector<2x128xf32>
    %c3_i32 = arith.constant 3 : i32
    %23 = vector.broadcast %c3_i32 : i32 to vector<2x128xi32>
    %24 = arith.select %22, %23, %19 : vector<2x128xi1>, vector<2x128xi32>
    %c0_i32_18 = arith.constant 0 : i32
    %25 = vector.broadcast %c0_i32_18 : i32 to vector<2x128xi32>
    %26 = arith.cmpi eq, %24, %25 : vector<2x128xi32>
    %c0_i32_19 = arith.constant 0 : i32
    %27 = vector.broadcast %c0_i32_19 : i32 to vector<2x128xi32>
    %28 = arith.cmpi eq, %4, %27 : vector<2x128xi32>
    %29 = arith.andi %26, %28 : vector<2x128xi1>
    %c0_20 = arith.constant 0 : index
    %c0_21 = arith.constant 0 : index
    %30 = vector.load %arg8[%c0_20, %c0_21] : memref<4x128xi32, #tpu.memory_space<vmem>>, vector<1x128xi32>
    %31 = arith.extui %29 : vector<2x128xi1> to vector<2x128xi32>
    %cst = arith.constant dense<0> : vector<128xi32>
    %32 = vector.multi_reduction <add>, %31, %cst [0] : vector<2x128xi32> to vector<128xi32>
    %33 = vector.shape_cast %32 : vector<128xi32> to vector<1x128xi32>
    %34 = arith.addi %30, %33 : vector<1x128xi32>
    %c0_22 = arith.constant 0 : index
    %c0_23 = arith.constant 0 : index
    %35 = vector.load %arg8[%c0_22, %c0_23] : memref<4x128xi32, #tpu.memory_space<vmem>>, vector<1x128xi32>
    tpu.vector_store %arg8[%c0_22, %c0_23], %34 {strides = array<i32>} : memref<4x128xi32, #tpu.memory_space<vmem>>, vector<1x128xi32>,
    %c0_24 = arith.constant 0 : index
    %c0_25 = arith.constant 0 : index
    %36 = vector.load %arg9[%c0_24, %c0_25] : memref<4x128xi32, #tpu.memory_space<vmem>>, vector<1x128xi32>
    %37 = arith.extui %26 : vector<2x128xi1> to vector<2x128xi32>
    %cst_26 = arith.constant dense<0> : vector<128xi32>
    %38 = vector.multi_reduction <add>, %37, %cst_26 [0] : vector<2x128xi32> to vector<128xi32>
    %39 = vector.shape_cast %38 : vector<128xi32> to vector<1x128xi32>
    %40 = arith.addi %36, %39 : vector<1x128xi32>
    %c0_27 = arith.constant 0 : index
    %c0_28 = arith.constant 0 : index
    %41 = vector.load %arg9[%c0_27, %c0_28] : memref<4x128xi32, #tpu.memory_space<vmem>>, vector<1x128xi32>
    tpu.vector_store %arg9[%c0_27, %c0_28], %40 {strides = array<i32>} : memref<4x128xi32, #tpu.memory_space<vmem>>, vector<1x128xi32>,
    %c0_29 = arith.constant 0 : index
    %c0_30 = arith.constant 0 : index
    %42 = vector.load %arg10[%c0_29, %c0_30] : memref<4x128xi32, #tpu.memory_space<vmem>>, vector<1x128xi32>
    %43 = arith.extui %28 : vector<2x128xi1> to vector<2x128xi32>
    %cst_31 = arith.constant dense<0> : vector<128xi32>
    %44 = vector.multi_reduction <add>, %43, %cst_31 [0] : vector<2x128xi32> to vector<128xi32>
    %45 = vector.shape_cast %44 : vector<128xi32> to vector<1x128xi32>
    %46 = arith.addi %42, %45 : vector<1x128xi32>
    %c0_32 = arith.constant 0 : index
    %c0_33 = arith.constant 0 : index
    %47 = vector.load %arg10[%c0_32, %c0_33] : memref<4x128xi32, #tpu.memory_space<vmem>>, vector<1x128xi32>
    tpu.vector_store %arg10[%c0_32, %c0_33], %46 {strides = array<i32>} : memref<4x128xi32, #tpu.memory_space<vmem>>, vector<1x128xi32>,
    %c1_i32_34 = arith.constant 1 : i32
    %48 = vector.broadcast %c1_i32_34 : i32 to vector<2x128xi32>
    %49 = arith.cmpi eq, %24, %48 : vector<2x128xi32>
    %c1_i32_35 = arith.constant 1 : i32
    %50 = vector.broadcast %c1_i32_35 : i32 to vector<2x128xi32>
    %51 = arith.cmpi eq, %4, %50 : vector<2x128xi32>
    %52 = arith.andi %49, %51 : vector<2x128xi1>
    %c1_36 = arith.constant 1 : index
    %c0_37 = arith.constant 0 : index
    %53 = vector.load %arg8[%c1_36, %c0_37] : memref<4x128xi32, #tpu.memory_space<vmem>>, vector<1x128xi32>
    %54 = arith.extui %52 : vector<2x128xi1> to vector<2x128xi32>
    %cst_38 = arith.constant dense<0> : vector<128xi32>
    %55 = vector.multi_reduction <add>, %54, %cst_38 [0] : vector<2x128xi32> to vector<128xi32>
    %56 = vector.shape_cast %55 : vector<128xi32> to vector<1x128xi32>
    %57 = arith.addi %53, %56 : vector<1x128xi32>
    %c1_39 = arith.constant 1 : index
    %c0_40 = arith.constant 0 : index
    %58 = vector.load %arg8[%c1_39, %c0_40] : memref<4x128xi32, #tpu.memory_space<vmem>>, vector<1x128xi32>
    tpu.vector_store %arg8[%c1_39, %c0_40], %57 {strides = array<i32>} : memref<4x128xi32, #tpu.memory_space<vmem>>, vector<1x128xi32>,
    %c1_41 = arith.constant 1 : index
    %c0_42 = arith.constant 0 : index
    %59 = vector.load %arg9[%c1_41, %c0_42] : memref<4x128xi32, #tpu.memory_space<vmem>>, vector<1x128xi32>
    %60 = arith.extui %49 : vector<2x128xi1> to vector<2x128xi32>
    %cst_43 = arith.constant dense<0> : vector<128xi32>
    %61 = vector.multi_reduction <add>, %60, %cst_43 [0] : vector<2x128xi32> to vector<128xi32>
    %62 = vector.shape_cast %61 : vector<128xi32> to vector<1x128xi32>
    %63 = arith.addi %59, %62 : vector<1x128xi32>
    %c1_44 = arith.constant 1 : index
    %c0_45 = arith.constant 0 : index
    %64 = vector.load %arg9[%c1_44, %c0_45] : memref<4x128xi32, #tpu.memory_space<vmem>>, vector<1x128xi32>
    tpu.vector_store %arg9[%c1_44, %c0_45], %63 {strides = array<i32>} : memref<4x128xi32, #tpu.memory_space<vmem>>, vector<1x128xi32>,
    %c1_46 = arith.constant 1 : index
    %c0_47 = arith.constant 0 : index
    %65 = vector.load %arg10[%c1_46, %c0_47] : memref<4x128xi32, #tpu.memory_space<vmem>>, vector<1x128xi32>
    %66 = arith.extui %51 : vector<2x128xi1> to vector<2x128xi32>
    %cst_48 = arith.constant dense<0> : vector<128xi32>
    %67 = vector.multi_reduction <add>, %66, %cst_48 [0] : vector<2x128xi32> to vector<128xi32>
    %68 = vector.shape_cast %67 : vector<128xi32> to vector<1x128xi32>
    %69 = arith.addi %65, %68 : vector<1x128xi32>
    %c1_49 = arith.constant 1 : index
    %c0_50 = arith.constant 0 : index
    %70 = vector.load %arg10[%c1_49, %c0_50] : memref<4x128xi32, #tpu.memory_space<vmem>>, vector<1x128xi32>
    tpu.vector_store %arg10[%c1_49, %c0_50], %69 {strides = array<i32>} : memref<4x128xi32, #tpu.memory_space<vmem>>, vector<1x128xi32>,
    %c2_i32_51 = arith.constant 2 : i32
    %71 = vector.broadcast %c2_i32_51 : i32 to vector<2x128xi32>
    %72 = arith.cmpi eq, %24, %71 : vector<2x128xi32>
    %c2_i32_52 = arith.constant 2 : i32
    %73 = vector.broadcast %c2_i32_52 : i32 to vector<2x128xi32>
    %74 = arith.cmpi eq, %4, %73 : vector<2x128xi32>
    %75 = arith.andi %72, %74 : vector<2x128xi1>
    %c2_53 = arith.constant 2 : index
    %c0_54 = arith.constant 0 : index
    %76 = vector.load %arg8[%c2_53, %c0_54] : memref<4x128xi32, #tpu.memory_space<vmem>>, vector<1x128xi32>
    %77 = arith.extui %75 : vector<2x128xi1> to vector<2x128xi32>
    %cst_55 = arith.constant dense<0> : vector<128xi32>
    %78 = vector.multi_reduction <add>, %77, %cst_55 [0] : vector<2x128xi32> to vector<128xi32>
    %79 = vector.shape_cast %78 : vector<128xi32> to vector<1x128xi32>
    %80 = arith.addi %76, %79 : vector<1x128xi32>
    %c2_56 = arith.constant 2 : index
    %c0_57 = arith.constant 0 : index
    %81 = vector.load %arg8[%c2_56, %c0_57] : memref<4x128xi32, #tpu.memory_space<vmem>>, vector<1x128xi32>
    tpu.vector_store %arg8[%c2_56, %c0_57], %80 {strides = array<i32>} : memref<4x128xi32, #tpu.memory_space<vmem>>, vector<1x128xi32>,
    %c2_58 = arith.constant 2 : index
    %c0_59 = arith.constant 0 : index
    %82 = vector.load %arg9[%c2_58, %c0_59] : memref<4x128xi32, #tpu.memory_space<vmem>>, vector<1x128xi32>
    %83 = arith.extui %72 : vector<2x128xi1> to vector<2x128xi32>
    %cst_60 = arith.constant dense<0> : vector<128xi32>
    %84 = vector.multi_reduction <add>, %83, %cst_60 [0] : vector<2x128xi32> to vector<128xi32>
    %85 = vector.shape_cast %84 : vector<128xi32> to vector<1x128xi32>
    %86 = arith.addi %82, %85 : vector<1x128xi32>
    %c2_61 = arith.constant 2 : index
    %c0_62 = arith.constant 0 : index
    %87 = vector.load %arg9[%c2_61, %c0_62] : memref<4x128xi32, #tpu.memory_space<vmem>>, vector<1x128xi32>
    tpu.vector_store %arg9[%c2_61, %c0_62], %86 {strides = array<i32>} : memref<4x128xi32, #tpu.memory_space<vmem>>, vector<1x128xi32>,
    %c2_63 = arith.constant 2 : index
    %c0_64 = arith.constant 0 : index
    %88 = vector.load %arg10[%c2_63, %c0_64] : memref<4x128xi32, #tpu.memory_space<vmem>>, vector<1x128xi32>
    %89 = arith.extui %74 : vector<2x128xi1> to vector<2x128xi32>
    %cst_65 = arith.constant dense<0> : vector<128xi32>
    %90 = vector.multi_reduction <add>, %89, %cst_65 [0] : vector<2x128xi32> to vector<128xi32>
    %91 = vector.shape_cast %90 : vector<128xi32> to vector<1x128xi32>
    %92 = arith.addi %88, %91 : vector<1x128xi32>
    %c2_66 = arith.constant 2 : index
    %c0_67 = arith.constant 0 : index
    %93 = vector.load %arg10[%c2_66, %c0_67] : memref<4x128xi32, #tpu.memory_space<vmem>>, vector<1x128xi32>
    tpu.vector_store %arg10[%c2_66, %c0_67], %92 {strides = array<i32>} : memref<4x128xi32, #tpu.memory_space<vmem>>, vector<1x128xi32>,
    %c3_i32_68 = arith.constant 3 : i32
    %94 = vector.broadcast %c3_i32_68 : i32 to vector<2x128xi32>
    %95 = arith.cmpi eq, %24, %94 : vector<2x128xi32>
    %c3_i32_69 = arith.constant 3 : i32
    %96 = vector.broadcast %c3_i32_69 : i32 to vector<2x128xi32>
    %97 = arith.cmpi eq, %4, %96 : vector<2x128xi32>
    %98 = arith.andi %95, %97 : vector<2x128xi1>
    %c3_70 = arith.constant 3 : index
    %c0_71 = arith.constant 0 : index
    %99 = vector.load %arg8[%c3_70, %c0_71] : memref<4x128xi32, #tpu.memory_space<vmem>>, vector<1x128xi32>
    %100 = arith.extui %98 : vector<2x128xi1> to vector<2x128xi32>
    %cst_72 = arith.constant dense<0> : vector<128xi32>
    %101 = vector.multi_reduction <add>, %100, %cst_72 [0] : vector<2x128xi32> to vector<128xi32>
    %102 = vector.shape_cast %101 : vector<128xi32> to vector<1x128xi32>
    %103 = arith.addi %99, %102 : vector<1x128xi32>
    %c3_73 = arith.constant 3 : index
    %c0_74 = arith.constant 0 : index
    %104 = vector.load %arg8[%c3_73, %c0_74] : memref<4x128xi32, #tpu.memory_space<vmem>>, vector<1x128xi32>
    tpu.vector_store %arg8[%c3_73, %c0_74], %103 {strides = array<i32>} : memref<4x128xi32, #tpu.memory_space<vmem>>, vector<1x128xi32>,
    %c3_75 = arith.constant 3 : index
    %c0_76 = arith.constant 0 : index
    %105 = vector.load %arg9[%c3_75, %c0_76] : memref<4x128xi32, #tpu.memory_space<vmem>>, vector<1x128xi32>
    %106 = arith.extui %95 : vector<2x128xi1> to vector<2x128xi32>
    %cst_77 = arith.constant dense<0> : vector<128xi32>
    %107 = vector.multi_reduction <add>, %106, %cst_77 [0] : vector<2x128xi32> to vector<128xi32>
    %108 = vector.shape_cast %107 : vector<128xi32> to vector<1x128xi32>
    %109 = arith.addi %105, %108 : vector<1x128xi32>
    %c3_78 = arith.constant 3 : index
    %c0_79 = arith.constant 0 : index
    %110 = vector.load %arg9[%c3_78, %c0_79] : memref<4x128xi32, #tpu.memory_space<vmem>>, vector<1x128xi32>
    tpu.vector_store %arg9[%c3_78, %c0_79], %109 {strides = array<i32>} : memref<4x128xi32, #tpu.memory_space<vmem>>, vector<1x128xi32>,
    %c3_80 = arith.constant 3 : index
    %c0_81 = arith.constant 0 : index
    %111 = vector.load %arg10[%c3_80, %c0_81] : memref<4x128xi32, #tpu.memory_space<vmem>>, vector<1x128xi32>
    %112 = arith.extui %97 : vector<2x128xi1> to vector<2x128xi32>
    %cst_82 = arith.constant dense<0> : vector<128xi32>
    %113 = vector.multi_reduction <add>, %112, %cst_82 [0] : vector<2x128xi32> to vector<128xi32>
    %114 = vector.shape_cast %113 : vector<128xi32> to vector<1x128xi32>
    %115 = arith.addi %111, %114 : vector<1x128xi32>
    %c3_83 = arith.constant 3 : index
    %c0_84 = arith.constant 0 : index
    %116 = vector.load %arg10[%c3_83, %c0_84] : memref<4x128xi32, #tpu.memory_space<vmem>>, vector<1x128xi32>
    tpu.vector_store %arg10[%c3_83, %c0_84], %115 {strides = array<i32>} : memref<4x128xi32, #tpu.memory_space<vmem>>, vector<1x128xi32>,
    %c0_i32_85 = arith.constant 0 : i32
    %117 = arith.cmpi eq, %arg2, %c0_i32_85 : i32
    %118 = arith.extui %117 : i1 to i32
    %c0_i32_86 = arith.constant 0 : i32
    %119 = arith.cmpi ne, %118, %c0_i32_86 : i32
    scf.if %119 {
      %c0_87 = arith.constant 0 : index
      %c0_88 = arith.constant 0 : index
      %120 = vector.load %arg8[%c0_87, %c0_88] : memref<4x128xi32, #tpu.memory_space<vmem>>, vector<4x128xi32>
      %cst_89 = arith.constant dense<0> : vector<4xi32>
      %121 = vector.multi_reduction <add>, %120, %cst_89 [1] : vector<4x128xi32> to vector<4xi32>
      %122 = vector.shape_cast %121 : vector<4xi32> to vector<4x1xi32>
      %c0_90 = arith.constant 0 : index
      %c0_91 = arith.constant 0 : index
      %c0_92 = arith.constant 0 : index
      %c0_93 = arith.constant 0 : index
      %123 = vector.load %arg5[%c0_90, %c0_91, %c0_92, %c0_93] : memref<1x1x4x1xi32, #tpu.memory_space<vmem>>, vector<1x1x4x1xi32>
      %124 = vector.shape_cast %123 : vector<1x1x4x1xi32> to vector<4x1xi32>
      %125 = vector.shape_cast %122 : vector<4x1xi32> to vector<1x1x4x1xi32>
      tpu.vector_store %arg5[%c0_90, %c0_91, %c0_92, %c0_93], %125 {strides = array<i32>} : memref<1x1x4x1xi32, #tpu.memory_space<vmem>>, vector<1x1x4x1xi32>,
      %c0_94 = arith.constant 0 : index
      %c0_95 = arith.constant 0 : index
      %126 = vector.load %arg9[%c0_94, %c0_95] : memref<4x128xi32, #tpu.memory_space<vmem>>, vector<4x128xi32>
      %cst_96 = arith.constant dense<0> : vector<4xi32>
      %127 = vector.multi_reduction <add>, %126, %cst_96 [1] : vector<4x128xi32> to vector<4xi32>
      %128 = vector.shape_cast %127 : vector<4xi32> to vector<4x1xi32>
      %c0_97 = arith.constant 0 : index
      %c0_98 = arith.constant 0 : index
      %c0_99 = arith.constant 0 : index
      %c0_100 = arith.constant 0 : index
      %129 = vector.load %arg6[%c0_97, %c0_98, %c0_99, %c0_100] : memref<1x1x4x1xi32, #tpu.memory_space<vmem>>, vector<1x1x4x1xi32>
      %130 = vector.shape_cast %129 : vector<1x1x4x1xi32> to vector<4x1xi32>
      %131 = vector.shape_cast %128 : vector<4x1xi32> to vector<1x1x4x1xi32>
      tpu.vector_store %arg6[%c0_97, %c0_98, %c0_99, %c0_100], %131 {strides = array<i32>} : memref<1x1x4x1xi32, #tpu.memory_space<vmem>>, vector<1x1x4x1xi32>,
      %c0_101 = arith.constant 0 : index
      %c0_102 = arith.constant 0 : index
      %132 = vector.load %arg10[%c0_101, %c0_102] : memref<4x128xi32, #tpu.memory_space<vmem>>, vector<4x128xi32>
      %cst_103 = arith.constant dense<0> : vector<4xi32>
      %133 = vector.multi_reduction <add>, %132, %cst_103 [1] : vector<4x128xi32> to vector<4xi32>
      %134 = vector.shape_cast %133 : vector<4xi32> to vector<4x1xi32>
      %c0_104 = arith.constant 0 : index
      %c0_105 = arith.constant 0 : index
      %c0_106 = arith.constant 0 : index
      %c0_107 = arith.constant 0 : index
      %135 = vector.load %arg7[%c0_104, %c0_105, %c0_106, %c0_107] : memref<1x1x4x1xi32, #tpu.memory_space<vmem>>, vector<1x1x4x1xi32>
      %136 = vector.shape_cast %135 : vector<1x1x4x1xi32> to vector<4x1xi32>
      %137 = vector.shape_cast %134 : vector<4x1xi32> to vector<1x1x4x1xi32>
      tpu.vector_store %arg7[%c0_104, %c0_105, %c0_106, %c0_107], %137 {strides = array<i32>} : memref<1x1x4x1xi32, #tpu.memory_space<vmem>>, vector<1x1x4x1xi32>,
    } else {
    }
    return
  }
  func.func @transform_0(%arg0: i32, %arg1: i32, %arg2: i32) -> (i32, i32, i32, i32) {
    %c1_i32 = arith.constant 1 : i32
    %0 = arith.muli %arg1, %c1_i32 : i32
    %1 = arith.addi %0, %arg2 : i32
    %c0_i32 = arith.constant 0 : i32
    %c0_i32_0 = arith.constant 0 : i32
    %c0_i32_1 = arith.constant 0 : i32
    return %arg0, %c0_i32, %1, %c0_i32_0 : i32, i32, i32, i32
  }
  func.func @transform_1(%arg0: i32, %arg1: i32, %arg2: i32) -> (i32, i32, i32, i32) {
    %c1_i32 = arith.constant 1 : i32
    %0 = arith.muli %arg1, %c1_i32 : i32
    %1 = arith.addi %0, %arg2 : i32
    %c0_i32 = arith.constant 0 : i32
    %c0_i32_0 = arith.constant 0 : i32
    %c0_i32_1 = arith.constant 0 : i32
    return %arg0, %c0_i32, %1, %c0_i32_0 : i32, i32, i32, i32
  }
  func.func @transform_2(%arg0: i32, %arg1: i32, %arg2: i32) -> (i32, i32, i32, i32) {
    %c0_i32 = arith.constant 0 : i32
    %c0_i32_0 = arith.constant 0 : i32
    %c0_i32_1 = arith.constant 0 : i32
    return %arg0, %arg1, %c0_i32, %c0_i32_0 : i32, i32, i32, i32
  }
  func.func @transform_3(%arg0: i32, %arg1: i32, %arg2: i32) -> (i32, i32, i32, i32) {
    %c0_i32 = arith.constant 0 : i32
    %c0_i32_0 = arith.constant 0 : i32
    %c0_i32_1 = arith.constant 0 : i32
    return %arg0, %arg1, %c0_i32, %c0_i32_0 : i32, i32, i32, i32
  }
  func.func @transform_4(%arg0: i32, %arg1: i32, %arg2: i32) -> (i32, i32, i32, i32) {
    %c0_i32 = arith.constant 0 : i32
    %c0_i32_0 = arith.constant 0 : i32
    %c0_i32_1 = arith.constant 0 : i32
    return %arg0, %arg1, %c0_i32, %c0_i32_0 : i32, i32, i32, i32
  }
}

</mosaic_0001>

<bundles_post_ra>
// kernel: tpu_custom_call.1
= control target key start
LH: loop header
LB: loop body
LE: loop exit
PB: predicated region body
PF: predicated region fallthrough
CT: control target
= control target key end

     0   :  { %10 = vsyncpa [#allocation6], 0  ;;  %s1184_s0 = inlined_call_operand.hbm [shape: s32[2,1,2,128], index: 0, kind: input, shape index: {}]   ;;  %s1185_s1 = inlined_call_operand.hbm [shape: f32[2,4,2,128], index: 1, kind: input, shape index: {}]   ;;  %s1186_s2 = inlined_call_operand.vmem [shape: s32[2,1,4,1], index: 2, kind: output, shape index: {0}]   ;;  %s1187_s3 = inlined_call_operand.vmem [shape: s32[2,1,4,1], index: 3, kind: output, shape index: {1}]   ;;  %s1188_s4 = inlined_call_operand.vmem [shape: s32[2,1,4,1], index: 4, kind: output, shape index: {2}]  }
   0x1   :  { %12 = vsyncpa [#allocation6 + $0x1], 0 }
   0x2   :  { %13 = vsyncpa [#allocation8], 0 }
   0x3   :  { %15 = vsyncpa [#allocation8 + $0x1], 0  ;;  %s977_s15 = smov 0   ;;  %s979_s16 = smov 0  }
   0x4   :  { %s981_s17 = smov 0   ;;  %s983_s18 = smov 0  }
   0x5   :  { %s985_s19 = smov 0   ;;  %s987_s20 = smov 0  }
   0x6 LB: > { %s749_s21 = sadd.s32 4294967295, %s947_s20   ;;  %s40_s22 = sadd.s32 1, %s943_s19  ;;  %s947_s20 = sphi %s987_s20, %s21_s20   ;;  %s943_s19 = sphi %s985_s19, %s1204_s19   ;;  %s939_s18 = sphi %s983_s18, %s1203_s18   ;;  %s935_s17 = sphi %s981_s17, %s1202_s17   ;;  %s931_s16 = sphi %s979_s16, %s1201_s16   ;;  %s927_s15 = sphi %s977_s15, %s1200_s15  }
   0x7   : > { %p42_p0 = scmp.ge.s32.totalorder %s40_s22, 2  ;;  %s51_s23 = sadd.s32 1, %s935_s17 }
   0x8   : > { %p58_p1 = scmp.ne.s32.totalorder %s935_s17, %s931_s16  ;;  %p59_p2 = scmp.eq.s32.totalorder %s947_s20, 0 }
   0x9   : > { %s1206_s22 = smov (%p42_p0, %s40_s22), 0  ;;  %p64_p4 = scmp.ne.s32.totalorder %s931_s16, %s927_s15 }
   0xa   : > { %p1013_p3 = por %p59_p2, %p58_p1  ;;  %s46_s25 = ssub.s32 %s943_s19, %s1206_s22 }
   0xb   : > { %p65_p5 = scmp.eq.s32.totalorder %s749_s21, 0  ;;  %p49_p6 = scmp.eq.s32.totalorder %s46_s25, 0 }
   0xc   : > { %p781_p8 = scmp.lt.s32.totalorder %s947_s20, 2  ;;  %s1029_s28 = sand.u32 1, %s935_s17  }
   0xd   : > { %p1020_p7 = por %p65_p5, %p64_p4  ;;  %s754_s29 = sshll.u32 %s943_s19, 1 }
   0xe   : > { %s1026_s27 = scalar_select %p49_p6, %s935_s17, %s51_s23  }
   0xf   : > { %s753_s30 = sshll.u32 %s1029_s28, 1  ;;  %s212_s7 = scalar_lea.hbm %s1184_s0, %s754_s29 }
  0x10   : > { %s214_s8 = sshll.u32 %s212_s7, 4  ;;  %s206_s9 = scalar_lea.vmem [#allocation5], %s753_s30  ;;  %s215_s8 = int_to_ptr.hbm [resolvable:$true] %s214_s8 }
  0x11   : > { %s216_s10 = sshll.u32 %s206_s9, 4  ;;  %p1038_p9 = pnand %p781_p8, %p1013_p3  ;;  %s217_s10 = int_to_ptr.vmem [resolvable:$true] %s216_s10 }
  0x12   : > { %p758_p10 = scmp.ge.s32.totalorder %s947_s20, 1  ;;  %p245_p11 = scmp.lt.s32.totalorder %s947_s20, 3 }
  0x13   : > { %s755_s12 = sshll.u32 %s1029_s28, 3  ;;  %s203_s13 = scalar_lea.sflag [#allocation6], %s1029_s28 }
  0x14   : > { %777 = dma.hbm_to_vmem [thread:$0]  (!%p1038_p9), %s215_s8, 32, %s217_s10, %s203_s13  }
  0x15   : > { %p246_p12 = pnand %p758_p10, %p245_p11  ;;  %s769_s14 = sshll.u32 %s943_s19, 3 }
  0x16   : > { %s227_s15 = scalar_lea.vmem [#allocation7], %s755_s12  ;;  %s234_s24 = scalar_lea.hbm %s1185_s1, %s769_s14 }
  0x17   : > { %s237_s21 = sshll.u32 %s227_s15, 4  ;;  %s235_s29 = sshll.u32 %s234_s24, 4  ;;  %s238_s21 = int_to_ptr.vmem [resolvable:$true] %s237_s21  ;;  %s236_s29 = int_to_ptr.hbm [resolvable:$true] %s235_s29 }
  0x18   : > { %s224_s30 = scalar_lea.sflag [#allocation8], %s1029_s28  ;;  %s949_s5 = smov 32  }
  0x19   : > { %s950_s6 = smov 2   ;;  %249 = sbr.rel (%p246_p12) target bundleno = 219 (0xdb), region = 28 }
  0x1a   : > { %780 = dma.hbm_to_vmem [thread:$0]  (!%p1038_p9), %s236_s29, 128, %s238_s21, %s224_s30, %s949_s5, %s949_s5, %s950_s6  }
  0x1b   : > { %s251_s7 = sand.u32 (!%p246_p12), 1, %s931_s16  }
  0x1c   : > { %s759_s8 = sshll.u32 (!%p246_p12), %s251_s7, 1  ;;  %s252_s9 = scalar_lea.sflag (!%p246_p12), [#allocation6], %s251_s7 }
  0x1d   : > { %s255_s10 = scalar_lea.vmem (!%p246_p12), [#allocation5], %s759_s8 }
  0x1e   : > { %918 = dma.done.wait (%p1020_p7), %s252_s9, 32  }
  0x1f   : > { %920 = vsyncadd (%p1020_p7), %s252_s9, 4294967264  ;;  %s760_s12 = sshll.u32 %s251_s7, 3  ;;  %s262_s13 = scalar_lea.sflag [#allocation8], %s251_s7 }
  0x20   : > { %s1060_s28 = scalar_lea.vmem [#allocation7], %s760_s12 }
  0x21   : > { %922 = dma.done.wait (%p1020_p7), %s262_s13, 128  }
  0x22   : > { %924 = vsyncadd (%p1020_p7), %s262_s13, 4294967168  ;;  %v951_v0 = vmov 0   ;;  %vm363_vm0 = vcmask 1041408   ;;  %v1069_v1 = vld [vmem:[%s255_s10] sm:$0x3]  ;;  %p314_p13 = scmp.lt.s32.totalorder %s939_s18, 1 }
  0x23   : > { %341 = vst [vmem:[#allocation4] sm:$0xf] %v951_v0  ;;  %v343_v2 = vld [vmem:[%s1060_s28] sm:$0x3]  ;;  %v764_v3 = vld [vmem:[%s1060_s28 + $0x2] sm:$0x3] }
  0x24   : > { %339 = vst [vmem:[#allocation2] sm:$0xf] %v951_v0  ;;  %vm359_vm1 = vcmp.eq.s32.totalorder %v1069_v1, 0  ;;  %vm396_vm2 = vcmp.eq.s32.totalorder %v1069_v1, 1  ;;  %vm346_vm3 = vcmp.gt.f32.partialorder %v764_v3, %v343_v2  ;;  %vm432_vm4 = vcmp.eq.s32.totalorder %v1069_v1, 2  ;;  %s1208_s18 = smov (!%p314_p13, %s939_s18), 1 }
  0x25   : > { %340 = vst [vmem:[#allocation3] sm:$0xf] %v951_v0  ;;  %v385_v4 = vsel %vm359_vm1, 1, %v951_v0  ;;  %v421_v5 = vsel %vm396_vm2, 1, %v951_v0  ;;  %vm468_vm5 = vcmp.eq.s32.totalorder %v1069_v1, 3  ;;  %v457_v8 = vsel %vm432_vm4, 1, %v951_v0 }
  0x26   : > { %v386_v6 = vsel %vm363_vm0, %v385_v4, 0  ;;  %v422_v7 = vsel %vm363_vm0, %v421_v5, 0  ;;  %v493_v9 = vsel %vm468_vm5, 1, %v951_v0  ;;  %v458_v12 = vsel %vm363_vm0, %v457_v8, 0  ;;  %v765_v14 = vld [vmem:[%s1060_s28 + $0x4] sm:$0x3] }
  0x27   : > { %v387_v10 = vrot.slane %v386_v6, 4  ;;  %v423_v11 = vrot.slane %v422_v7, 4  ;;  %v494_v13 = vsel %vm363_vm0, %v493_v9, 0  ;;  %v459_v15 = vrot.slane %v458_v12, 4  ;;  %v766_v19 = vld [vmem:[%s1060_s28 + $0x6] sm:$0x3] }
  0x28   : > { %v495_v16 = vrot.slane %v494_v13, 4  ;;  %v347_v17 = vsel %vm346_vm3, %v764_v3, %v343_v2  ;;  %v348_v18 = vsel %vm346_vm3, 1, %v951_v0  ;;  %s761_s26 = sshll.u32 %s1208_s18, 2 }
  0x29   : > { %v388_v20 = vadd.s32 %v387_v10, %v386_v6  ;;  %v424_v21 = vadd.s32 %v423_v11, %v422_v7  ;;  %vm351_vm6 = vcmp.gt.f32.partialorder %v765_v14, %v347_v17  ;;  %v460_v22 = vadd.s32 %v459_v15, %v458_v12  ;;  %s320_s15 = scalar_lea.vmem %s1186_s2, %s761_s26  ;;  %s334_s25 = scalar_lea.vmem %s1188_s4, %s761_s26 }
  0x2a   : > { %v496_v23 = vadd.s32 %v495_v16, %v494_v13  ;;  %v352_v24 = vsel %vm351_vm6, %v765_v14, %v347_v17  ;;  %v353_v25 = vsel %vm351_vm6, 2, %v348_v18  ;;  %v384_v37 = vld [vmem:[#allocation4] sm:$0x1]  ;;  %v420_v42 = vld [vmem:[#allocation4 + $0x1] sm:$0x1]  ;;  %s327_s29 = scalar_lea.vmem %s1187_s3, %s761_s26 }
  0x2b   : > { %v389_v26 = vrot.slane %v388_v20, 2  ;;  %v425_v27 = vrot.slane %v424_v21, 2  ;;  %vm356_vm7 = vcmp.gt.f32.partialorder %v766_v19, %v352_v24  ;;  %v461_v28 = vrot.slane %v460_v22, 2  ;;  %v456_v49 = vld [vmem:[#allocation4 + $0x2] sm:$0x1] }
  0x2c   : > { %v497_v29 = vrot.slane %v496_v23, 2  ;;  %v357_v30 = vsel %vm356_vm7, 3, %v353_v25  ;;  %v492_v50 = vld [vmem:[#allocation4 + $0x3] sm:$0x1]  ;;  %v373_v16 = vld [vmem:[#allocation3] sm:$0x1] }
  0x2d   : > { %v390_v31 = vadd.s32 %v389_v26, %v388_v20  ;;  %v426_v32 = vadd.s32 %v425_v27, %v424_v21  ;;  %vm358_vm8 = vcmp.eq.s32.totalorder %v357_v30, 0  ;;  %vm395_vm9 = vcmp.eq.s32.totalorder %v357_v30, 1  ;;  %v409_v21 = vld [vmem:[#allocation3 + $0x1] sm:$0x1]  ;;  %v434_v4 = vld [vmem:[#allocation2 + $0x2] sm:$0x1] }
  0x2e   : > { %v462_v33 = vadd.s32 %v461_v28, %v460_v22  ;;  %v498_v34 = vadd.s32 %v497_v29, %v496_v23  ;;  %v374_v35 = vsel %vm358_vm8, 1, %v951_v0  ;;  %v410_v36 = vsel %vm395_vm9, 1, %v951_v0  ;;  %vm1107_vm12 = vmand %vm358_vm8, %vm359_vm1 }
  0x2f   : > { %v391_v38 = vrot.slane %v390_v31, 1  ;;  %v427_v39 = vrot.slane %v426_v32, 1  ;;  %v375_v40 = vsel %vm363_vm0, %v374_v35, 0  ;;  %v411_v41 = vsel %vm363_vm0, %v410_v36, 0  ;;  %vm1114_vm13 = vmand %vm395_vm9, %vm396_vm2 }
  0x30   : > { %v463_v43 = vrot.slane %v462_v33, 1  ;;  %v499_v44 = vrot.slane %v498_v34, 1  ;;  %v376_v45 = vrot.slane %v375_v40, 4  ;;  %v412_v46 = vrot.slane %v411_v41, 4 }
  0x31   : > { %v392_v47 = vadd.s32 %v391_v38, %v390_v31  ;;  %v428_v48 = vadd.s32 %v427_v39, %v426_v32  ;;  %vm431_vm10 = vcmp.eq.s32.totalorder %v357_v30, 2  ;;  %vm467_vm11 = vcmp.eq.s32.totalorder %v357_v30, 3 }
  0x32   : > { %v464_v52 = vadd.s32 %v463_v43, %v462_v33  ;;  %v500_v53 = vadd.s32 %v499_v44, %v498_v34  ;;  %v377_v54 = vadd.s32 %v376_v45, %v375_v40  ;;  %v413_v55 = vadd.s32 %v412_v46, %v411_v41  ;;  %vm1123_vm14 = vmand %vm431_vm10, %vm432_vm4  ;;  %v481_v43 = vld [vmem:[#allocation3 + $0x3] sm:$0x1] }
  0x33   : > { %v393_v57 = vadd.s32 %v392_v47, %v384_v37  ;;  %v429_v58 = vadd.s32 %v428_v48, %v420_v42  ;;  %v446_v59 = vsel %vm431_vm10, 1, %v951_v0  ;;  %v482_v60 = vsel %vm467_vm11, 1, %v951_v0  ;;  %vm1130_vm15 = vmand %vm467_vm11, %vm468_vm5  ;;  %v445_v37 = vld [vmem:[#allocation3 + $0x2] sm:$0x1] }
  0x34   : > { %v465_v62 = vadd.s32 %v464_v52, %v456_v49  ;;  %v501_v63 = vadd.s32 %v500_v53, %v492_v50  ;;  %v378_v2 = vrot.slane %v377_v54, 2  ;;  %v414_v3 = vrot.slane %v413_v55, 2 }
  0x35   : > { %394 = vst [vmem:[#allocation4] sm:$0x1] %v393_v57  ;;  %vm507_vm1 = vcmask 1043456   ;;  %v447_v5 = vsel %vm363_vm0, %v446_v59, 0  ;;  %v483_v6 = vsel %vm363_vm0, %v482_v60, 0  ;;  %v362_v7 = vsel %vm1107_vm12, 1, %v951_v0 }
  0x36   : > { %v399_v8 = vsel %vm1114_vm13, 1, %v951_v0  ;;  %430 = vst [vmem:[#allocation4 + $0x1] sm:$0x1] %v429_v58  ;;  %v379_v1 = vadd.s32 %v378_v2, %v377_v54  ;;  %v415_v9 = vadd.s32 %v414_v3, %v413_v55  ;;  %v448_v10 = vrot.slane %v447_v5, 4  ;;  %v361_v59 = vld [vmem:[#allocation2] sm:$0x1] }
  0x37   : > { %v484_v11 = vrot.slane %v483_v6, 4  ;;  %466 = vst [vmem:[#allocation4 + $0x2] sm:$0x1] %v465_v62  ;;  %v364_v12 = vsel %vm363_vm0, %v362_v7, 0  ;;  %v400_v13 = vsel %vm363_vm0, %v399_v8, 0  ;;  %v435_v14 = vsel %vm1123_vm14, 1, %v951_v0 }
  0x38   : > { %v471_v15 = vsel %vm1130_vm15, 1, %v951_v0  ;;  %502 = vst [vmem:[#allocation4 + $0x3] sm:$0x1] %v501_v63  ;;  %v380_v17 = vrot.slane %v379_v1, 1  ;;  %v416_v18 = vrot.slane %v415_v9, 1  ;;  %v449_v19 = vadd.s32 %v448_v10, %v447_v5 }
  0x39   : > { %v485_v20 = vadd.s32 %v484_v11, %v483_v6  ;;  %v365_v22 = vrot.slane %v364_v12, 4  ;;  %v401_v23 = vrot.slane %v400_v13, 4  ;;  %v436_v24 = vsel %vm363_vm0, %v435_v14, 0  ;;  %v398_v60 = vld [vmem:[#allocation2 + $0x1] sm:$0x1] }
  0x3a   : > { %v472_v25 = vsel %vm363_vm0, %v471_v15, 0  ;;  %v381_v26 = vadd.s32 %v380_v17, %v379_v1  ;;  %v417_v27 = vadd.s32 %v416_v18, %v415_v9  ;;  %v450_v28 = vrot.slane %v449_v19, 2  ;;  %v470_v1 = vld [vmem:[#allocation2 + $0x3] sm:$0x1] }
  0x3b   : > { %v486_v29 = vrot.slane %v485_v20, 2  ;;  %v366_v30 = vadd.s32 %v365_v22, %v364_v12  ;;  %v402_v31 = vadd.s32 %v401_v23, %v400_v13  ;;  %v437_v0 = vrot.slane %v436_v24, 4 }
  0x3c   : > { %v473_v32 = vrot.slane %v472_v25, 4  ;;  %v382_v33 = vadd.s32 %v381_v26, %v373_v16  ;;  %v418_v34 = vadd.s32 %v417_v27, %v409_v21  ;;  %v451_v35 = vadd.s32 %v450_v28, %v449_v19 }
  0x3d   : > { %v487_v36 = vadd.s32 %v486_v29, %v485_v20  ;;  %v367_v38 = vrot.slane %v366_v30, 2  ;;  %v403_v39 = vrot.slane %v402_v31, 2  ;;  %v438_v40 = vadd.s32 %v437_v0, %v436_v24 }
  0x3e   : > { %v474_v41 = vadd.s32 %v473_v32, %v472_v25  ;;  %383 = vst [vmem:[#allocation3] sm:$0x1] %v382_v33  ;;  %v452_v42 = vrot.slane %v451_v35, 1  ;;  %vm521_vm0 = vcmask 3072  }
  0x3f   : > { %v488_v44 = vrot.slane %v487_v36, 1  ;;  %v538_v45 = vld [vmem:[#allocation4] sm:$0xf]  ;;  %419 = vst [vmem:[#allocation3 + $0x1] sm:$0x1] %v418_v34  ;;  %v368_v46 = vadd.s32 %v367_v38, %v366_v30  ;;  %v404_v47 = vadd.s32 %v403_v39, %v402_v31  ;;  %v439_v48 = vrot.slane %v438_v40, 2 }
  0x40   : > { %v475_v49 = vrot.slane %v474_v41, 2  ;;  %v539_v50 = vsel %vm507_vm1, %v538_v45, 0  ;;  %v453_v51 = vadd.s32 %v452_v42, %v451_v35 }
  0x41   : > { %v489_v52 = vadd.s32 %v488_v44, %v487_v36  ;;  %v541_v53 = vshrl.u32 %v539_v50, 16  ;;  %v369_v54 = vrot.slane %v368_v46, 1  ;;  %v405_v55 = vrot.slane %v404_v47, 1 }
  0x42   : > { %v440_v56 = vadd.s32 %v439_v48, %v438_v40  ;;  %v454_v57 = vadd.s32 %v453_v51, %v445_v37  ;;  %v476_v61 = vadd.s32 %v475_v49, %v474_v41  ;;  %v540_v18 = vand.u32 65535, %v539_v50 }
  0x43   : > { %v490_v58 = vadd.s32 %v489_v52, %v481_v43  ;;  %v543_v62 = vcvt.s32.f32 %v541_v53  ;;  %v370_v63 = vadd.s32 %v369_v54, %v368_v46  ;;  %v406_v2 = vadd.s32 %v405_v55, %v404_v47 }
  0x44   : > { %v441_v3 = vrot.slane %v440_v56, 1  ;;  %455 = vst [vmem:[#allocation3 + $0x2] sm:$0x1] %v454_v57  ;;  %v477_v5 = vrot.slane %v476_v61, 1  ;;  %v542_v23 = vcvt.s32.f32 %v540_v18 }
  0x45   : > { %546 = vadd.xlane.f32.xlu1 %v543_v62  ;;  %491 = vst [vmem:[#allocation3 + $0x3] sm:$0x1] %v490_v58  ;;  %v371_v6 = vadd.s32 %v370_v63, %v361_v59  ;;  %v407_v7 = vadd.s32 %v406_v2, %v398_v60 }
  0x46   : > { %v442_v8 = vadd.s32 %v441_v3, %v440_v56  ;;  %v478_v9 = vadd.s32 %v477_v5, %v476_v61 }
  0x47   : > { %372 = vst [vmem:[#allocation2] sm:$0x1] %v371_v6 }
  0x48   : > { %v443_v10 = vadd.s32 %v442_v8, %v434_v4  ;;  %408 = vst [vmem:[#allocation2 + $0x1] sm:$0x1] %v407_v7  ;;  %v479_v11 = vadd.s32 %v478_v9, %v470_v1 }
  0x4a   : > { %444 = vst [vmem:[#allocation2 + $0x2] sm:$0x1] %v443_v10 }
  0x4b   : > { %480 = vst [vmem:[#allocation2 + $0x3] sm:$0x1] %v479_v11 }
  0x4c   : > { %v523_v12 = vld [vmem:[#allocation3] sm:$0xf] }
  0x4d   : > { %v524_v13 = vsel %vm507_vm1, %v523_v12, 0 }
  0x4e   : > { %v525_v14 = vand.u32 65535, %v524_v13  ;;  %v526_v24 = vshrl.u32 %v524_v13, 16 }
  0x50   : > { %v527_v15 = vcvt.s32.f32 %v525_v14  ;;  %v528_v25 = vcvt.s32.f32 %v526_v24 }
  0x52   : > { %v506_v16 = vld [vmem:[#allocation2] sm:$0xf]  ;;  %529 = vadd.xlane.f32.xlu2 %v527_v15 }
  0x53   : > { %v508_v17 = vsel %vm507_vm1, %v506_v16, 0 }
  0x54   : > { %v510_v19 = vshrl.u32 %v508_v17, 16  ;;  %v509_v20 = vand.u32 65535, %v508_v17 }
  0x56   : > { %v512_v21 = vcvt.s32.f32 %v510_v19  ;;  %v511_v22 = vcvt.s32.f32 %v509_v20 }
  0x58   : > { %515 = vadd.xlane.f32.xlu0 %v512_v21  ;;  %513 = vadd.xlane.f32.xlu1 %v511_v22 }
  0x5a   : > { %544 = vadd.xlane.f32.xlu2 %v542_v23 }
  0x60   : > { %531 = vadd.xlane.f32.xlu0 %v528_v25 }
  0xb8   : > { %v547_v26 = vpop.xlane.xlu1 %546 }
  0xb9   : > { %v549_v28 = vcvt.f32.s32 %v547_v26 }
  0xbb   : > { %v550_v34 = vshll.u32 %v549_v28, 16 }
  0xc5   : > { %v530_v27 = vpop.xlane.xlu2 %529 }
  0xc6   : > { %v533_v40 = vcvt.f32.s32 %v530_v27 }
  0xcb   : > { %v516_v29 = vpop.xlane.xlu0 %515  ;;  %v514_v30 = vpop.xlane.xlu1 %513 }
  0xcc   : > { %v518_v31 = vcvt.f32.s32 %v516_v29  ;;  %v517_v0 = vcvt.f32.s32 %v514_v30 }
  0xcd   : > { %v545_v33 = vpop.xlane.xlu2 %544 }
  0xce   : > { %v519_v32 = vshll.u32 %v518_v31, 16  ;;  %v548_v35 = vcvt.f32.s32 %v545_v33 }
  0xd0   : > { %v520_v36 = vadd.s32 %v519_v32, %v517_v0  ;;  %v551_v37 = vadd.s32 %v550_v34, %v548_v35 }
  0xd2   : > { %522 = vst.msk [vmem:[%s320_s15] sm:$0xf] %vm521_vm0, %v520_v36 }
  0xd3   : > { %552 = vst.msk [vmem:[%s334_s25] sm:$0xf] %vm521_vm0, %v551_v37  ;;  %v532_v38 = vpop.xlane.xlu0 %531 }
  0xd4   : > { %v534_v39 = vcvt.f32.s32 %v532_v38 }
  0xd6   : > { %v535_v41 = vshll.u32 %v534_v39, 16 }
  0xd8   : > { %v536_v42 = vadd.s32 %v535_v41, %v533_v40 }
  0xda   : > { %537 = vst.msk [vmem:[%s327_s29] sm:$0xf] %vm521_vm0, %v536_v42 }
  0xdb PF: > { %s21_s20 = sadd.s32 1, %s947_s20   ;;  %s1200_s15 = smov %s931_s16 }
  0xdc   : > { %p18_p0 = scmp.ge.s32.totalorder %s21_s20, 4   ;;  %s1201_s16 = smov %s935_s17 }
  0xdd   : > { %s1202_s17 = smov %s1026_s27  ;;  %s1203_s18 = smov %s943_s19 }
  0xde   : > { %s1204_s19 = smov %s1206_s22  ;;  %20 = sbr.rel (!%p18_p0) target bundleno = 6 (0x6), region = 116 }
  0xe3   :  { %618 = vsyncpa [#allocation6], 1 }
  0xe4   :  { %620 = vsyncpa [#allocation6 + $0x1], 1 }
  0xe5   :  { %621 = vsyncpa [#allocation8], 1 }
  0xe6   :  { %623 = vsyncpa [#allocation8 + $0x1], 1 }

</bundles_post_ra>
